<compile_context>
chip_gen: v7x
topology: tpu7x:2x2x1
jax: 0.10.0
libtpu: 0.0.40
codegen_flags: <defaults>
</compile_context>

<pallas_src>
import jax
import jax.numpy as jnp
from jax.experimental import pallas as pl
from jax.experimental.pallas import tpu as pltpu

K_IN = 16 * 22      # 352 = flattened input features


def _round_up(a, m):
    return (a + m - 1) // m * m


def _mlp_kernel(x_ref,
                w1_ref, b1_ref,
                w2_ref, b2_ref,
                w3_ref, b3_ref,
                w4_ref, b4_ref,
                w5t_ref, b5_ref,
                o_ref):
    """Fused MLP forward for one batch tile: (TILE_B, 352) f32 -> (1, 1, TILE_B)."""
    # Cast in-kernel (VPU has slack); avoids a separate HBM pad/cast pass.
    x = x_ref[...].astype(jnp.bfloat16)                               # (TILE_B, 352)

    # fcIn + ReLU  (dominant matmul, bf16 inputs, f32 accumulation)
    h = jnp.dot(x, w1_ref[...], preferred_element_type=jnp.float32) + b1_ref[...]
    h = jnp.maximum(h, 0.0)

    # fcStart + ReLU
    h = jnp.dot(h.astype(jnp.bfloat16), w2_ref[...],
                preferred_element_type=jnp.float32) + b2_ref[...]
    h = jnp.maximum(h, 0.0)

    # fcInner + ReLU  (numLayers == 1; Dropout(p=0) is identity -> omitted)
    h = jnp.dot(h.astype(jnp.bfloat16), w3_ref[...],
                preferred_element_type=jnp.float32) + b3_ref[...]
    h = jnp.maximum(h, 0.0)

    # fcEnd + ReLU
    h = jnp.dot(h.astype(jnp.bfloat16), w4_ref[...],
                preferred_element_type=jnp.float32) + b4_ref[...]
    h = jnp.maximum(h, 0.0)

    # fc_out + Sigmoid, computed transposed so the store is lane-dense:
    #   z[r, b] = sum_k w5t[r, k] * h[b, k]   (only row 0 is real; rows 1..7 pad)
    z = jax.lax.dot_general(
        w5t_ref[...], h,
        dimension_numbers=(((1,), (1,)), ((), ())),
        preferred_element_type=jnp.float32)                           # (8, TILE_B)
    z = z[0:1, :] + b5_ref[...]                                       # (1, TILE_B)
    e = jnp.exp(-z)                                                   # EUP
    sig = pl.reciprocal(1.0 + e, approx=True)                         # EUP
    o_ref[...] = sig[None]                                            # (1, 1, TILE_B)


def simplified_model_forward(x, params, tile_b=2048):
    """x: (B, 16, 22) float32. Returns (B, 1) float32."""
    B = x.shape[0]
    x2d = x.reshape(B, -1)          # free view, streamed to the kernel as raw f32

    # Batch tile: multiple of 8 sublanes; keep >= 2 grid steps when the batch
    # allows it so the "parallel" axis can shard across both TCs on v7x and x
    # stays double-buffered.  Ragged last tile is handled by Pallas (OOB reads
    # ignored / OOB writes dropped), so no batch padding pass is needed.
    tile_b = _round_up(max(8, min(tile_b, 4096)), 8)
    half_b = max(8, _round_up(pl.cdiv(B, 2), 8))
    tile_b = min(tile_b, half_b)
    num_tiles = pl.cdiv(B, tile_b)

    (w1, b1), (w2, b2), (w3, b3), (w4, b4), (w5, b5) = params
    w1b = w1.astype(jnp.bfloat16)                                      # (352, 128)
    w2b = w2.astype(jnp.bfloat16)
    w3b = w3.astype(jnp.bfloat16)
    w4b = w4.astype(jnp.bfloat16)
    # Final layer weight transposed to (1, 16) and sublane-padded to (8, 16)
    # so the last matmul emits a lane-dense (., TILE_B) result.  Kept in f32
    # (negligible FLOPs).
    w5t = jnp.pad(w5.T, ((0, 7), (0, 0))).astype(jnp.float32)          # (8, 16)

    weights = (w1b, b1.astype(jnp.float32),
               w2b, b2.astype(jnp.float32),
               w3b, b3.astype(jnp.float32),
               w4b, b4.astype(jnp.float32),
               w5t, b5.astype(jnp.float32))

    def const_spec(a):
        nd = a.ndim
        return pl.BlockSpec(a.shape, lambda i, _nd=nd: (0,) * _nd)

    # x block: last dim == full array dim (352), so no lane padding needed.
    in_specs = [pl.BlockSpec((tile_b, K_IN), lambda i: (i, 0))]
    in_specs += [const_spec(a) for a in weights]
    out_spec = pl.BlockSpec((1, 1, tile_b), lambda i: (i, 0, 0))

    out = pl.pallas_call(
        _mlp_kernel,
        grid=(num_tiles,),
        in_specs=in_specs,
        out_specs=out_spec,
        out_shape=jax.ShapeDtypeStruct((num_tiles, 1, tile_b), jnp.float32),
        compiler_params=pltpu.CompilerParams(
            dimension_semantics=("parallel",)),
    )(x2d, *weights)

    # Lane-dense (num_tiles, 1, tile_b) slab back to (B, 1); rows past B in the
    # ragged last tile are garbage and sliced off here.
    return out.reshape(num_tiles * tile_b)[:B].reshape(B, 1)


def init_params(key):
    """Deterministic params. Linear(in, out): W stored as (in, out), b as (1, out)."""
    dims = [(16 * 22, 128), (128, 32), (32, 32), (32, 16), (16, 1)]
    params = []
    for (din, dout) in dims:
        key, kw, kb = jax.random.split(key, 3)
        bound = 1.0 / jnp.sqrt(din)  # same scale as torch's default Linear init
        w = jax.random.uniform(kw, (din, dout), jnp.float32, -bound, bound)
        b = jax.random.uniform(kb, (1, dout), jnp.float32, -bound, bound)
        params.append((w, b))
    return params


def reference_forward(x, params):
    """Pure-JAX f32 reference for sanity checking."""
    h = x.reshape(x.shape[0], -1)
    (w1, b1), (w2, b2), (w3, b3), (w4, b4), (w5, b5) = params
    h = jnp.maximum(h @ w1 + b1, 0.0)
    h = jnp.maximum(h @ w2 + b2, 0.0)
    h = jnp.maximum(h @ w3 + b3, 0.0)
    h = jnp.maximum(h @ w4 + b4, 0.0)
    return jax.nn.sigmoid(h @ w5 + b5)


if __name__ == "__main__":
    key = jax.random.PRNGKey(0)
    key, kx, kx2 = jax.random.split(key, 3)
    params = init_params(key)

    # Small single-tile case (B=8 -> one (8, 352) tile).
    B = 8
    x = jax.random.normal(kx, (B, 16, 22), dtype=jnp.float32)
    out = jax.block_until_ready(simplified_model_forward(x, params))
    ref = reference_forward(x, params)
    assert out.shape == (B, 1), out.shape
    assert jnp.max(jnp.abs(out - ref)) < 3e-2, float(jnp.max(jnp.abs(out - ref)))

    # Default tiling on B=300: clamp gives tile_b=152 -> 2 grid steps with a
    # ragged last tile (exercises megacore split + OOB masking).
    B2 = 300
    x2 = jax.random.normal(kx2, (B2, 16, 22), dtype=jnp.float32)
    out2 = jax.block_until_ready(simplified_model_forward(x2, params))
    ref2 = reference_forward(x2, params)
    assert out2.shape == (B2, 1), out2.shape
    assert jnp.max(jnp.abs(out2 - ref2)) < 3e-2, float(jnp.max(jnp.abs(out2 - ref2)))

    # Explicit small tile (128): 3 grid steps, ragged last tile of 44 rows.
    out3 = jax.block_until_ready(simplified_model_forward(x2, params, tile_b=128))
    assert out3.shape == (B2, 1), out3.shape
    assert jnp.max(jnp.abs(out3 - ref2)) < 3e-2, float(jnp.max(jnp.abs(out3 - ref2)))

    print("KERNEL_OK")
</pallas_src>

<mosaic_0001>
module attributes {stable_mosaic.version = 11 : i64} {
  func.func @_mlp_kernel(%arg0: i32, %arg1: memref<8x352xf32, #tpu.memory_space<vmem>>, %arg2: memref<352x128xbf16, #tpu.memory_space<vmem>>, %arg3: memref<1x128xf32, #tpu.memory_space<vmem>>, %arg4: memref<128x32xbf16, #tpu.memory_space<vmem>>, %arg5: memref<1x32xf32, #tpu.memory_space<vmem>>, %arg6: memref<32x32xbf16, #tpu.memory_space<vmem>>, %arg7: memref<1x32xf32, #tpu.memory_space<vmem>>, %arg8: memref<32x16xbf16, #tpu.memory_space<vmem>>, %arg9: memref<1x16xf32, #tpu.memory_space<vmem>>, %arg10: memref<8x16xf32, #tpu.memory_space<vmem>>, %arg11: memref<1x1xf32, #tpu.memory_space<vmem>>, %arg12: memref<1x1x8xf32, #tpu.memory_space<vmem>>) attributes {dimension_semantics = [#tpu.dimension_semantics<parallel>], iteration_bounds = array<i64: 1>, scalar_prefetch = 0 : i64, scratch_operands = 0 : i64, tpu.core_type = #tpu.core_type<tc>, window_params = [{transform_indices = @transform_0, window_bounds = array<i64: 8, 352>}, {pipeline_mode = #tpu.pipeline_mode<synchronous>, transform_indices = @transform_1, window_bounds = array<i64: 352, 128>}, {pipeline_mode = #tpu.pipeline_mode<synchronous>, transform_indices = @transform_2, window_bounds = array<i64: 1, 128>}, {pipeline_mode = #tpu.pipeline_mode<synchronous>, transform_indices = @transform_3, window_bounds = array<i64: 128, 32>}, {pipeline_mode = #tpu.pipeline_mode<synchronous>, transform_indices = @transform_4, window_bounds = array<i64: 1, 32>}, {pipeline_mode = #tpu.pipeline_mode<synchronous>, transform_indices = @transform_5, window_bounds = array<i64: 32, 32>}, {pipeline_mode = #tpu.pipeline_mode<synchronous>, transform_indices = @transform_6, window_bounds = array<i64: 1, 32>}, {pipeline_mode = #tpu.pipeline_mode<synchronous>, transform_indices = @transform_7, window_bounds = array<i64: 32, 16>}, {pipeline_mode = #tpu.pipeline_mode<synchronous>, transform_indices = @transform_8, window_bounds = array<i64: 1, 16>}, {pipeline_mode = #tpu.pipeline_mode<synchronous>, transform_indices = @transform_9, window_bounds = array<i64: 8, 16>}, {pipeline_mode = #tpu.pipeline_mode<synchronous>, transform_indices = @transform_10, window_bounds = array<i64: 1, 1>}, {transform_indices = @transform_11, window_bounds = array<i64: 1, 1, 8>}]} {
    %c0 = arith.constant 0 : index
    %c0_0 = arith.constant 0 : index
    %0 = vector.load %arg1[%c0, %c0_0] : memref<8x352xf32, #tpu.memory_space<vmem>>, vector<8x352xf32>
    %1 = arith.truncf %0 : vector<8x352xf32> to vector<8x352xbf16>
    %c0_1 = arith.constant 0 : index
    %c0_2 = arith.constant 0 : index
    %2 = vector.load %arg2[%c0_1, %c0_2] : memref<352x128xbf16, #tpu.memory_space<vmem>>, vector<352x128xbf16>
    %cst = arith.constant dense<0.000000e+00> : vector<8x128xf32>
    %3 = tpu.matmul %1, %2, %cst {dimension_numbers = #tpu.dot_dimension_numbers<[1], [0], [0], [1], [0, 0, 1, 1], [], []>} : vector<8x352xbf16>, vector<352x128xbf16>, vector<8x128xf32> -> vector<8x128xf32>
    %c0_3 = arith.constant 0 : index
    %c0_4 = arith.constant 0 : index
    %4 = vector.load %arg3[%c0_3, %c0_4] : memref<1x128xf32, #tpu.memory_space<vmem>>, vector<1x128xf32>
    %5 = vector.broadcast %4 : vector<1x128xf32> to vector<8x128xf32>
    %6 = arith.addf %3, %5 : vector<8x128xf32>
    %cst_5 = arith.constant 0.000000e+00 : f32
    %7 = vector.broadcast %cst_5 : f32 to vector<8x128xf32>
    %8 = arith.maximumf %6, %7 : vector<8x128xf32>
    %9 = arith.truncf %8 : vector<8x128xf32> to vector<8x128xbf16>
    %c0_6 = arith.constant 0 : index
    %c0_7 = arith.constant 0 : index
    %10 = vector.load %arg4[%c0_6, %c0_7] : memref<128x32xbf16, #tpu.memory_space<vmem>>, vector<128x32xbf16>
    %cst_8 = arith.constant dense<0.000000e+00> : vector<8x32xf32>
    %11 = tpu.matmul %9, %10, %cst_8 {dimension_numbers = #tpu.dot_dimension_numbers<[1], [0], [0], [1], [0, 0, 1, 1], [], []>} : vector<8x128xbf16>, vector<128x32xbf16>, vector<8x32xf32> -> vector<8x32xf32>
    %c0_9 = arith.constant 0 : index
    %c0_10 = arith.constant 0 : index
    %12 = vector.load %arg5[%c0_9, %c0_10] : memref<1x32xf32, #tpu.memory_space<vmem>>, vector<1x32xf32>
    %13 = vector.broadcast %12 : vector<1x32xf32> to vector<8x32xf32>
    %14 = arith.addf %11, %13 : vector<8x32xf32>
    %cst_11 = arith.constant 0.000000e+00 : f32
    %15 = vector.broadcast %cst_11 : f32 to vector<8x32xf32>
    %16 = arith.maximumf %14, %15 : vector<8x32xf32>
    %17 = arith.truncf %16 : vector<8x32xf32> to vector<8x32xbf16>
    %c0_12 = arith.constant 0 : index
    %c0_13 = arith.constant 0 : index
    %18 = vector.load %arg6[%c0_12, %c0_13] : memref<32x32xbf16, #tpu.memory_space<vmem>>, vector<32x32xbf16>
    %cst_14 = arith.constant dense<0.000000e+00> : vector<8x32xf32>
    %19 = tpu.matmul %17, %18, %cst_14 {dimension_numbers = #tpu.dot_dimension_numbers<[1], [0], [0], [1], [0, 0, 1, 1], [], []>} : vector<8x32xbf16>, vector<32x32xbf16>, vector<8x32xf32> -> vector<8x32xf32>
    %c0_15 = arith.constant 0 : index
    %c0_16 = arith.constant 0 : index
    %20 = vector.load %arg7[%c0_15, %c0_16] : memref<1x32xf32, #tpu.memory_space<vmem>>, vector<1x32xf32>
    %21 = vector.broadcast %20 : vector<1x32xf32> to vector<8x32xf32>
    %22 = arith.addf %19, %21 : vector<8x32xf32>
    %cst_17 = arith.constant 0.000000e+00 : f32
    %23 = vector.broadcast %cst_17 : f32 to vector<8x32xf32>
    %24 = arith.maximumf %22, %23 : vector<8x32xf32>
    %25 = arith.truncf %24 : vector<8x32xf32> to vector<8x32xbf16>
    %c0_18 = arith.constant 0 : index
    %c0_19 = arith.constant 0 : index
    %26 = vector.load %arg8[%c0_18, %c0_19] : memref<32x16xbf16, #tpu.memory_space<vmem>>, vector<32x16xbf16>
    %cst_20 = arith.constant dense<0.000000e+00> : vector<8x16xf32>
    %27 = tpu.matmul %25, %26, %cst_20 {dimension_numbers = #tpu.dot_dimension_numbers<[1], [0], [0], [1], [0, 0, 1, 1], [], []>} : vector<8x32xbf16>, vector<32x16xbf16>, vector<8x16xf32> -> vector<8x16xf32>
    %c0_21 = arith.constant 0 : index
    %c0_22 = arith.constant 0 : index
    %28 = vector.load %arg9[%c0_21, %c0_22] : memref<1x16xf32, #tpu.memory_space<vmem>>, vector<1x16xf32>
    %29 = vector.broadcast %28 : vector<1x16xf32> to vector<8x16xf32>
    %30 = arith.addf %27, %29 : vector<8x16xf32>
    %cst_23 = arith.constant 0.000000e+00 : f32
    %31 = vector.broadcast %cst_23 : f32 to vector<8x16xf32>
    %32 = arith.maximumf %30, %31 : vector<8x16xf32>
    %c0_24 = arith.constant 0 : index
    %c0_25 = arith.constant 0 : index
    %33 = vector.load %arg10[%c0_24, %c0_25] : memref<8x16xf32, #tpu.memory_space<vmem>>, vector<8x16xf32>
    %cst_26 = arith.constant dense<0.000000e+00> : vector<8x8xf32>
    %34 = tpu.matmul %33, %32, %cst_26 {dimension_numbers = #tpu.dot_dimension_numbers<[1], [1], [0], [0], [0, 0, 1, 0], [], []>} : vector<8x16xf32>, vector<8x16xf32>, vector<8x8xf32> -> vector<8x8xf32>
    %35 = vector.extract_strided_slice %34 {offsets = [0, 0], sizes = [1, 8], strides = [1, 1]} : vector<8x8xf32> to vector<1x8xf32>
    %c0_27 = arith.constant 0 : index
    %c0_28 = arith.constant 0 : index
    %36 = vector.load %arg11[%c0_27, %c0_28] : memref<1x1xf32, #tpu.memory_space<vmem>>, vector<1x1xf32>
    %37 = vector.broadcast %36 : vector<1x1xf32> to vector<1x8xf32>
    %38 = arith.addf %35, %37 : vector<1x8xf32>
    %cst_29 = arith.constant 0.000000e+00 : f32
    %39 = vector.broadcast %cst_29 : f32 to vector<1x8xf32>
    %40 = arith.subf %39, %38 : vector<1x8xf32>
    %41 = math.exp %40 : vector<1x8xf32>
    %cst_30 = arith.constant 1.000000e+00 : f32
    %42 = vector.broadcast %cst_30 : f32 to vector<1x8xf32>
    %43 = arith.addf %42, %41 : vector<1x8xf32>
    %44 = tpu.reciprocal %43 {approx = true} : vector<1x8xf32> -> vector<1x8xf32>
    %45 = vector.shape_cast %44 : vector<1x8xf32> to vector<1x1x8xf32>
    %c0_31 = arith.constant 0 : index
    %c0_32 = arith.constant 0 : index
    %c0_33 = arith.constant 0 : index
    %46 = vector.load %arg12[%c0_31, %c0_32, %c0_33] : memref<1x1x8xf32, #tpu.memory_space<vmem>>, vector<1x1x8xf32>
    tpu.vector_store %arg12[%c0_31, %c0_32, %c0_33], %45 {strides = array<i32>} : memref<1x1x8xf32, #tpu.memory_space<vmem>>, vector<1x1x8xf32>,
    return
  }
  func.func @transform_0(%arg0: i32) -> (i32, i32) {
    %c0_i32 = arith.constant 0 : i32
    %c0_i32_0 = arith.constant 0 : i32
    return %arg0, %c0_i32 : i32, i32
  }
  func.func @transform_1(%arg0: i32) -> (i32, i32) {
    %c0_i32 = arith.constant 0 : i32
    %c0_i32_0 = arith.constant 0 : i32
    %c0_i32_1 = arith.constant 0 : i32
    return %c0_i32, %c0_i32_0 : i32, i32
  }
  func.func @transform_2(%arg0: i32) -> (i32, i32) {
    %c0_i32 = arith.constant 0 : i32
    %c0_i32_0 = arith.constant 0 : i32
    %c0_i32_1 = arith.constant 0 : i32
    return %c0_i32, %c0_i32_0 : i32, i32
  }
  func.func @transform_3(%arg0: i32) -> (i32, i32) {
    %c0_i32 = arith.constant 0 : i32
    %c0_i32_0 = arith.constant 0 : i32
    %c0_i32_1 = arith.constant 0 : i32
    return %c0_i32, %c0_i32_0 : i32, i32
  }
  func.func @transform_4(%arg0: i32) -> (i32, i32) {
    %c0_i32 = arith.constant 0 : i32
    %c0_i32_0 = arith.constant 0 : i32
    %c0_i32_1 = arith.constant 0 : i32
    return %c0_i32, %c0_i32_0 : i32, i32
  }
  func.func @transform_5(%arg0: i32) -> (i32, i32) {
    %c0_i32 = arith.constant 0 : i32
    %c0_i32_0 = arith.constant 0 : i32
    %c0_i32_1 = arith.constant 0 : i32
    return %c0_i32, %c0_i32_0 : i32, i32
  }
  func.func @transform_6(%arg0: i32) -> (i32, i32) {
    %c0_i32 = arith.constant 0 : i32
    %c0_i32_0 = arith.constant 0 : i32
    %c0_i32_1 = arith.constant 0 : i32
    return %c0_i32, %c0_i32_0 : i32, i32
  }
  func.func @transform_7(%arg0: i32) -> (i32, i32) {
    %c0_i32 = arith.constant 0 : i32
    %c0_i32_0 = arith.constant 0 : i32
    %c0_i32_1 = arith.constant 0 : i32
    return %c0_i32, %c0_i32_0 : i32, i32
  }
  func.func @transform_8(%arg0: i32) -> (i32, i32) {
    %c0_i32 = arith.constant 0 : i32
    %c0_i32_0 = arith.constant 0 : i32
    %c0_i32_1 = arith.constant 0 : i32
    return %c0_i32, %c0_i32_0 : i32, i32
  }
  func.func @transform_9(%arg0: i32) -> (i32, i32) {
    %c0_i32 = arith.constant 0 : i32
    %c0_i32_0 = arith.constant 0 : i32
    %c0_i32_1 = arith.constant 0 : i32
    return %c0_i32, %c0_i32_0 : i32, i32
  }
  func.func @transform_10(%arg0: i32) -> (i32, i32) {
    %c0_i32 = arith.constant 0 : i32
    %c0_i32_0 = arith.constant 0 : i32
    %c0_i32_1 = arith.constant 0 : i32
    return %c0_i32, %c0_i32_0 : i32, i32
  }
  func.func @transform_11(%arg0: i32) -> (i32, i32, i32) {
    %c0_i32 = arith.constant 0 : i32
    %c0_i32_0 = arith.constant 0 : i32
    %c0_i32_1 = arith.constant 0 : i32
    return %arg0, %c0_i32, %c0_i32_0 : i32, i32, i32
  }
}

</mosaic_0001>

<bundles_post_ra>
// kernel: tpu_custom_call.1
= control target key start
LH: loop header
LB: loop body
LE: loop exit
PB: predicated region body
PF: predicated region fallthrough
CT: control target
= control target key end

     0   :  { %s1116_s0 = inlined_call_operand.vmem [shape: f32[8,352], index: 0, kind: input, shape index: {}]   ;;  %s1117_s1 = inlined_call_operand.hbm [shape: bf16[352,128], index: 1, kind: input, shape index: {}]   ;;  %s1118_s2 = inlined_call_operand.vmem [shape: f32[1,128], index: 2, kind: input, shape index: {}]   ;;  %s1119_s3 = inlined_call_operand.vmem [shape: bf16[128,32], index: 3, kind: input, shape index: {}]   ;;  %s1120_s4 = inlined_call_operand.vmem [shape: f32[1,32], index: 4, kind: input, shape index: {}]   ;;  %s1121_s5 = inlined_call_operand.vmem [shape: bf16[32,32], index: 5, kind: input, shape index: {}]   ;;  %s1122_s6 = inlined_call_operand.vmem [shape: f32[1,32], index: 6, kind: input, shape index: {}]   ;;  %s1123_s7 = inlined_call_operand.vmem [shape: bf16[32,16], index: 7, kind: input, shape index: {}]   ;;  %s1124_s8 = inlined_call_operand.vmem [shape: f32[1,16], index: 8, kind: input, shape index: {}]   ;;  %s1125_s9 = inlined_call_operand.vmem [shape: f32[8,16], index: 9, kind: input, shape index: {}]   ;;  %s1126_s10 = inlined_call_operand.<no memory space> [shape: f32[1,1], index: 10, kind: input, shape index: {}]   ;;  %s1127_s11 = inlined_call_operand.hbm [shape: f32[1,1,8], index: 11, kind: output, shape index: {}]  }
   0x1   :  { %v16_v0 = vstv %s1126_s10 }
   0x2   :  { %17 = vst [vmem:[#allocation2] sm:$0x1] %v16_v0 }
   0x3   :  { %18 = vsyncpa [#allocation4], 0 }
   0x4   :  { %19 = vsyncpa [#allocation5], 0  ;;  %s931_s19 = smov [#allocation3]   ;;  %s883_s23 = scalar_lea.hbm %s1117_s1, 2816 }
   0x5   :  { %s27_s20 = sshll.u32 %s931_s19, 4  ;;  %p884_p0 = scmp.ne.s32.totalorder %s1117_s1, %s883_s23  ;;  %s28_s20 = int_to_ptr.vmem [resolvable:$true] %s27_s20 }
   0x6   :  { %p887_p1 = scmp.lt.u32.totalorder %s883_s23, %s1117_s1 }
   0x8   :  { %p889_p2 = pnand %p887_p1, %p884_p0 }
   0xa   :  { %892 = shalt.err (!%p889_p2)
}
   0xb   :  { %s893_s10 = scalar_lea.vmem %s28_s20, 2816  ;;  %p898_p4 = scmp.lt.s32.totalorder %s28_s20, %s28_s20 }
   0xc   :  { %p894_p3 = scmp.ne.s32.totalorder %s28_s20, %s893_s10  ;;  %p899_p5 = scmp.lt.s32.totalorder %s893_s10, %s893_s10 }
   0xe   :  { %p900_p6 = por %p899_p5, %p898_p4 }
  0x10   :  { %p901_p7 = pnand %p900_p6, %p894_p3 }
  0x12   :  { %904 = shalt.err (!%p901_p7)
}
  0x13   :  { %s932_s28 = smov 64   ;;  %s933_s29 = smov 4  }
  0x14   :  { %33 = dma.hbm_to_vmem [thread:$0]  %s1117_s1, 2816, %s28_s20, [#allocation4], %s932_s28, %s932_s28, %s933_s29  }
  0x15   :  { %927 = dma.done.wait [#allocation4], 2816  }
  0x16   :  { %928 = vsyncadd [#allocation4], 4294964480  ;;  %v934_v1 = vmov 0.0   ;;  %vm935_vm0 = vmmov 0   ;;  %v845_v2 = vld [vmem:[#allocation3 + $0x40] sm:$0xff]   ;;  %v847_v4 = vld [vmem:[#allocation3 + $0x48] sm:$0xff]  }
  0x17   :  { %780 = vmatprep.subr.bf16.mxu1 %v934_v1  ;;  %792 = vmatprep.mubr.msk.bf16.mxu1 %vm935_vm0, %v934_v1  ;;  %v846_v3 = vld [vmem:[#allocation3] sm:$0xff]   ;;  %v848_v5 = vld [vmem:[#allocation3 + $0x8] sm:$0xff]   ;;  %v849_v6 = vld [vmem:[#allocation3 + $0x50] sm:$0xff]   ;;  %vm245_vm1 = vcmask 785408   ;;  %vm467_vm2 = vcmask 261120   ;;  %vm581_vm3 = vcmask 130048  }
  0x18   :  { %734 = vmatprep.subr.bf16.mxu0 %v845_v2  ;;  %v851_v7 = vld [vmem:[#allocation3 + $0x80] sm:$0xff]   ;;  %v850_v8 = vld [vmem:[#allocation3 + $0x10] sm:$0xff]   ;;  %v852_v9 = vld [vmem:[#allocation3 + $0x58] sm:$0xff]   ;;  %vm674_vm4 = vcmask 57344  }
  0x19   :  { %735 = vmatpush3.bf16.msra.mxu0 %v846_v3  ;;  %781 = vmatpush3.bf16.msra.mxu1 %v851_v7  ;;  %v854_v10 = vld [vmem:[#allocation3 + $0x88] sm:$0xff]   ;;  %v853_v11 = vld [vmem:[#allocation3 + $0x18] sm:$0xff]   ;;  %v855_v12 = vld [vmem:[#allocation3 + $0x60] sm:$0xff]  }
  0x1a   :  { %736 = vmatprep.subr.bf16.mxu0 %v847_v4  ;;  %782 = vmatprep.subr.bf16.mxu1 %v934_v1  ;;  %v857_v13 = vld [vmem:[#allocation3 + $0x90] sm:$0xff]   ;;  %v856_v14 = vld [vmem:[#allocation3 + $0x20] sm:$0xff]   ;;  %v858_v15 = vld [vmem:[#allocation3 + $0x68] sm:$0xff]  }
  0x1b   :  { %v860_v16 = vld [vmem:[#allocation3 + $0x98] sm:$0xff]   ;;  %v859_v17 = vld [vmem:[#allocation3 + $0x28] sm:$0xff]   ;;  %v861_v18 = vld [vmem:[#allocation3 + $0x70] sm:$0xff]  }
  0x1c   :  { %v863_v19 = vld [vmem:[#allocation3 + $0xa0] sm:$0xff]   ;;  %v862_v21 = vld [vmem:[#allocation3 + $0x30] sm:$0xff]   ;;  %v864_v22 = vld [vmem:[#allocation3 + $0x78] sm:$0xff]  }
  0x1d   :  { %737 = vmatpush3.bf16.msra.mxu0 %v848_v5  ;;  %783 = vmatpush3.bf16.msra.mxu1 %v854_v10  ;;  %v57_v20 = vld [vmem:[%s1116_s0 + $0x8] sm:$0xff]  ;;  %v58_v25 = vld [vmem:[%s1116_s0 + $0x10] sm:$0xff]  ;;  %v865_v26 = vld [vmem:[#allocation3 + $0x38] sm:$0xff]   ;;  %v936_v10 = vmov 0  }
  0x1e   :  { %738 = vmatprep.subr.bf16.mxu0 %v849_v6  ;;  %784 = vmatprep.subr.bf16.mxu1 %v934_v1  ;;  %v60_v23 = vpack.c.bf16 %v57_v20, %v57_v20  ;;  %v866_v24 = vld [vmem:[#allocation3 + $0xa8] sm:$0xff]   ;;  %v56_v27 = vld [vmem:[%s1116_s0] sm:$0xff]  ;;  %v61_v28 = vpack.c.bf16 %v58_v25, %v58_v25  ;;  %v870_v33 = vld [vmem:[%s1119_s3 + $0x18] sm:$0xff]  }
  0x1f   :  { %v867_v29 = vld [vmem:[%s1119_s3] sm:$0xff]   ;;  %v59_v30 = vpack.c.bf16 %v56_v27, %v56_v27  ;;  %v868_v31 = vld [vmem:[%s1119_s3 + $0x8] sm:$0xff]   ;;  %v869_v32 = vld [vmem:[%s1119_s3 + $0x10] sm:$0xff]   ;;  %844 = vset.pattern.permute.xlu0 %v936_v10 }
  0x20   :  { %281 = vmatprep.mubr.bf16.mxu0 %v60_v23  ;;  %v871_v34 = vld [vmem:[%s1119_s3 + $0x20] sm:$0xff]   ;;  %v872_v35 = vld [vmem:[%s1119_s3 + $0x28] sm:$0xff]   ;;  %v873_v36 = vld [vmem:[%s1119_s3 + $0x30] sm:$0xff]  }
  0x21   :  { %739 = vmatpush3.bf16.msra.mxu0 %v850_v8  ;;  %785 = vmatpush3.bf16.msra.mxu1 %v857_v13  ;;  %v874_v37 = vld [vmem:[%s1119_s3 + $0x38] sm:$0xff]   ;;  %v691_v44 = vld [vmem:[%s1118_s2] ss:$0 sm:$0xff]  ;;  %v876_v53 = vld [vmem:[%s1121_s5 + $0x8] sm:$0xff]  }
  0x22   :  { %740 = vmatprep.subr.bf16.mxu0 %v852_v9  ;;  %786 = vmatprep.subr.bf16.mxu1 %v934_v1  ;;  %v875_v52 = vld [vmem:[%s1121_s5] sm:$0xff]   ;;  %v878_v63 = vld [vmem:[%s1123_s7 + $0x8] sm:$0xff]  }
  0x23   :  { %v715_v54 = vld [vmem:[%s1120_s4] ss:$0 sm:$0xff] }
  0x24   :  { %v877_v62 = vld [vmem:[%s1123_s7] sm:$0xff]  }
  0x25   :  { %741 = vmatpush3.bf16.msra.mxu0 %v853_v11  ;;  %787 = vmatpush3.bf16.msra.mxu1 %v860_v16  ;;  %v724_v0 = vld [vmem:[%s1122_s6] ss:$0 sm:$0xff] }
  0x26   :  { %742 = vmatprep.subr.bf16.mxu0 %v855_v12  ;;  %788 = vmatprep.subr.bf16.mxu1 %v934_v1  ;;  %v658_v9 = vld [vmem:[#allocation2] sm:$0x1] }
  0x27   :  { %661 = vperm.xlu0 %844, %v658_v9   ;;  %v728_v11 = vld [vmem:[%s1124_s8] ss:$0 sm:$0xff]  ;;  %s937_s8 = smov [#allocation6]  }
  0x28   :  { %s682_s23 = sshll.u32 %s937_s8, 4  ;;  %s683_s23 = int_to_ptr.vmem [resolvable:$true] %s682_s23 }
  0x29   :  { %743 = vmatpush3.bf16.msra.mxu0 %v856_v14  ;;  %789 = vmatpush3.bf16.msra.mxu1 %v863_v19  ;;  %s909_s24 = scalar_lea.vmem %s683_s23, 32  ;;  %p910_p9 = scmp.lt.s32.totalorder %s683_s23, %s683_s23 }
  0x2a   :  { %744 = vmatprep.subr.bf16.mxu0 %v858_v15  ;;  %790 = vmatprep.subr.bf16.mxu1 %v934_v1 }
  0x2d   :  { %745 = vmatpush3.bf16.msra.mxu0 %v859_v17  ;;  %791 = vmatpush3.bf16.msra.mxu1 %v866_v24 }
  0x2e   :  { %746 = vmatprep.subr.bf16.mxu0 %v861_v18  ;;  %796 = vmatprep.subr.bf16.mxu1 %v934_v1  ;;  %v664_v18 = vlaneseq }
  0x30   :  { %793 = vmatmul.mubr.msk.bf16.vlgmr.msra.gmra.mrb[0].mxu1 %vm245_vm1, %v61_v28  ;;  %v665_v19 = vshrl.u32 %v664_v18, 7 }
  0x31   :  { %747 = vmatpush3.bf16.msra.mxu0 %v862_v21  ;;  %797 = vmatpush3.bf16.msra.mxu1 %v867_v29 }
  0x32   :  { %748 = vmatprep.subr.bf16.mxu0 %v864_v22  ;;  %812 = vmatprep.mubr.msk.bf16.mxu1 %vm935_vm0, %v934_v1  ;;  %v666_v20 = vsub.s32 0, %v665_v19 }
  0x33   :  { %798 = vmatprep.subr.bf16.mxu1 %v934_v1 }
  0x35   :  { %749 = vmatpush3.bf16.msra.mxu0 %v865_v26  ;;  %799 = vmatpush3.bf16.msra.mxu1 %v868_v31 }
  0x36   :  { %816 = vmatprep.subr.bf16.mxu0 %v934_v1  ;;  %800 = vmatprep.subr.bf16.mxu1 %v934_v1 }
  0x38   :  { %282 = vmatmul.mubr.bf16.vlgmr.msra.gmra.mrb[0].mxu0 %v59_v30 }
  0x39   :  { %820 = vmatprep.mubr.msk.bf16.mxu0 %vm935_vm0, %v934_v1  ;;  %801 = vmatpush3.bf16.msra.mxu1 %v869_v32 }
  0x3a   :  { %802 = vmatprep.subr.bf16.mxu1 %v934_v1  ;;  %817 = vmatpush3.bf16.msra.mxu0 %v875_v52 }
  0x3b   :  { %818 = vmatprep.subr.bf16.mxu0 %v934_v1 }
  0x3d   :  { %803 = vmatpush3.bf16.msra.mxu1 %v870_v33 }
  0x3e   :  { %804 = vmatprep.subr.bf16.mxu1 %v934_v1  ;;  %819 = vmatpush3.bf16.msra.mxu0 %v876_v53 }
  0x3f   :  { %824 = vmatprep.subr.bf16.mxu0 %v934_v1 }
  0x41   :  { %805 = vmatpush3.bf16.msra.mxu1 %v871_v34 }
  0x42   :  { %806 = vmatprep.subr.bf16.mxu1 %v934_v1 }
  0x45   :  { %807 = vmatpush3.bf16.msra.mxu1 %v872_v35 }
  0x46   :  { %808 = vmatprep.subr.bf16.mxu1 %v934_v1 }
  0x49   :  { %809 = vmatpush3.bf16.msra.mxu1 %v873_v36 }
  0x4a   :  { %810 = vmatprep.subr.bf16.mxu1 %v934_v1 }
  0x4d   :  { %811 = vmatpush3.bf16.msra.mxu1 %v874_v37 }
  0xa6   :  { %v662_v21 = vpop.permute.xlu0 %661 }
  0xa7   :  { %v667_v22 = vrot.slane %v662_v21, %v666_v20 }
 0x103   :  { %v323_v38 = vpop.f32.mrb[0].mxu1 }
 0x104   :  { %v794_v39 = vpop.f32.mrb[1].mxu1 }
 0x105   :  { %v326_v40 = vpop.f32.mrb[2].mxu1 }
 0x106   :  { %v795_v42 = vpop.f32.mrb[3].mxu1 }
 0x10b   :  { %v750_v41 = vpop.f32.mrb[0].mxu0 }
 0x10c   :  { %v751_v43 = vpop.f32.mrb[1].mxu0 }
 0x10d   :  { %v752_v45 = vadd.f32 %v751_v43, %v750_v41  ;;  %v753_v46 = vpop.f32.mrb[2].mxu0 }
 0x10e   :  { %v754_v47 = vpop.f32.mrb[3].mxu0 }
 0x10f   :  { %v284_v48 = vadd.f32 %v752_v45, %v691_v44 }
 0x111   :  { %v324_v49 = vadd.f32 %v323_v38, %v284_v48 }
 0x113   :  { %v329_v50 = vmax.f32 %v324_v49, 0.0 }
 0x115   :  { %v330_v51 = vpack.c.bf16 %v329_v50, %v329_v50 }
 0x117   :  { %813 = vmatmul.mubr.bf16.vlgmr.msra.gmra.mrb[4].mxu1 %v330_v51 }
 0x1ea   :  { %v436_v55 = vpop.f32.mrb[4].mxu1 }
 0x1eb   :  { %v437_v56 = vadd.f32 %v715_v54, %v436_v55  ;;  %v814_v57 = vpop.f32.mrb[5].mxu1 }
 0x1ec   :  { %v439_v58 = vpop.f32.mrb[6].mxu1 }
 0x1ed   :  { %v442_v59 = vmax.f32 %v437_v56, 0.0  ;;  %v815_v60 = vpop.f32.mrb[7].mxu1 }
 0x1ef   :  { %v443_v61 = vpack.c.bf16 %v442_v59, %v442_v59 }
 0x1f1   :  { %821 = vmatmul.mubr.msk.bf16.vlgmr.msra.gmra.mrb[4].mxu0 %vm467_vm2, %v443_v61 }
 0x1f2   :  { %828 = vmatprep.mubr.msk.bf16.mxu0 %vm935_vm0, %v934_v1  ;;  %825 = vmatpush3.bf16.msra.mxu0 %v877_v62 }
 0x1f3   :  { %826 = vmatprep.subr.bf16.mxu0 %v934_v1 }
 0x1f6   :  { %827 = vmatpush3.bf16.msra.mxu0 %v878_v63 }
 0x1f7   :  { %832 = vmatprep.subr.mxu0 %v934_v1 }
 0x2c4   :  { %v505_v2 = vpop.f32.mrb[4].mxu0 }
 0x2c5   :  { %v506_v3 = vadd.f32 %v724_v0, %v505_v2  ;;  %v822_v4 = vpop.f32.mrb[5].mxu0 }
 0x2c6   :  { %v508_v5 = vpop.f32.mrb[6].mxu0 }
 0x2c7   :  { %v511_v6 = vmax.f32 %v506_v3, 0.0  ;;  %v823_v7 = vpop.f32.mrb[7].mxu0 }
 0x2c9   :  { %v512_v8 = vpack.c.bf16 %v511_v6, %v511_v6 }
 0x2cb   :  { %829 = vmatmul.mubr.msk.bf16.vlgmr.msra.gmra.mrb[8].mxu0 %vm467_vm2, %v512_v8 }
 0x2cc   :  { %834 = vmatprep.mubr.msk.f32.mxu0 %vm935_vm0, %v934_v1  ;;  %v580_v1 = vld [vmem:[%s1125_s9] sm:$0xff]  ;;  %s905_s9 = scalar_lea.vmem %s683_s23, 16 }
 0x2cd   :  { %p906_p8 = scmp.ne.s32.totalorder %s683_s23, %s905_s9  ;;  %p911_p10 = scmp.lt.s32.totalorder %s909_s24, %s905_s9 }
 0x2cf   :  { %p912_p11 = por %p911_p10, %p910_p9 }
 0x2d1   :  { %p913_p12 = pnand %p912_p11, %p906_p8 }
 0x39e   :  { %v573_v12 = vpop.f32.mrb[8].mxu0 }
 0x39f   :  { %v574_v13 = vadd.f32 %v728_v11, %v573_v12  ;;  %v830_v14 = vpop.f32.mrb[9].mxu0 }
 0x3a0   :  { %v576_v15 = vpop.f32.mrb[10].mxu0 }
 0x3a1   :  { %v579_v16 = vmax.f32 %v574_v13, 0.0  ;;  %v831_v17 = vpop.f32.mrb[11].mxu0 }
 0x3a3   :  { %833 = vmatpush3.xpose.msk.msra.mxu0 %vm581_vm3, %v579_v16 }
 0x3a6   :  { %835 = vmatmul.mubr.msk.f32.vlgmr.msra.gmra.mrb[12].mxu0 %vm581_vm3, %v580_v1 }
 0x479   :  { %v654_v23 = vpop.f32.mrb[12].mxu0 }
 0x47a   :  { %v668_v24 = vadd.f32 %v667_v22, %v654_v23  ;;  %v836_v25 = vpop.f32.mrb[13].mxu0 }
 0x47c   :  { %v669_v26 = vsub.f32 0.0, %v668_v24 }
 0x47e   :  { %v670_v27 = vmul.f32 1.442695, %v669_v26 }
 0x480   :  { %879 = vpow2.f32 %v670_v27 }
 0x48a   :  { %v880_v28 = vpop.eup %879 }
 0x48b   :  { %v672_v29 = vadd.f32 1.0, %v880_v28 }
 0x48d   :  { %881 = vrcp.f32 %v672_v29 }
 0x497   :  { %v882_v30 = vpop.eup %881 }
 0x498   :  { %675 = vst.msk [vmem:[#allocation6] sm:$0x1] %vm674_vm4, %v882_v30 }
 0x499   :  { %916 = shalt.err (!%p913_p12)
}
 0x49a   :  { %s917_s27 = scalar_lea.hbm %s1127_s11, 16 }
 0x49b   :  { %p918_p13 = scmp.ne.s32.totalorder %s1127_s11, %s917_s27  ;;  %p921_p0 = scmp.lt.u32.totalorder %s917_s27, %s1127_s11 }
 0x49d   :  { %p923_p1 = pnand %p921_p0, %p918_p13 }
 0x49f   :  { %926 = shalt.err (!%p923_p1)
}
 0x4a0   :  { %685 = dma.vmem_to_hbm [thread:$0]  %s683_s23, 16, %s1127_s11, [#allocation5]  }
 0x4a1   :  { %929 = dma.done.wait [#allocation5], 16  }
 0x4a2   :  { %930 = vsyncadd [#allocation5], 4294967280 }
 0x4a3   :  { %689 = vsyncpa [#allocation4], 1 }
 0x4a4   :  { %690 = vsyncpa [#allocation5], 1 }

</bundles_post_ra>
